<compile_context>
chip_gen: v7x
topology: tpu7x:2x2x1
jax: 0.10.0
libtpu: 0.0.40
codegen_flags: <defaults>
</compile_context>

<pallas_src>
import functools

import jax
import jax.numpy as jnp
from jax.experimental import pallas as pl
from jax.experimental.pallas import tpu as pltpu

LN_EPS = 1e-5  # nn.LayerNorm default (the module's eps arg is ignored upstream)


# ---------------------------------------------------------------------------
# Kernel bodies
# ---------------------------------------------------------------------------
def _layernorm(x, gamma, beta, *, eps, d_valid, d_padded):
    """LayerNorm over the last axis, ignoring padded lanes beyond d_valid."""
    if d_padded != d_valid:
        col = jax.lax.broadcasted_iota(jnp.int32, x.shape, 1)
        lane_mask = col < d_valid
        x = jnp.where(lane_mask, x, 0.0)
    inv_d = jnp.float32(1.0 / d_valid)
    mean = jnp.sum(x, axis=-1, keepdims=True) * inv_d
    centered = x - mean
    if d_padded != d_valid:
        centered = jnp.where(lane_mask, centered, 0.0)
    var = jnp.sum(centered * centered, axis=-1, keepdims=True) * inv_d
    inv = jax.lax.rsqrt(var + eps)
    return centered * inv * gamma + beta


def _res_ln_eval_kernel(x_ref, r_ref, g_ref, b_ref, o_ref, *, eps, d_valid, d_padded):
    # eval mode: dropout is identity
    x = x_ref[...].astype(jnp.float32) + r_ref[...].astype(jnp.float32)
    y = _layernorm(x, g_ref[...].astype(jnp.float32), b_ref[...].astype(jnp.float32),
                   eps=eps, d_valid=d_valid, d_padded=d_padded)
    o_ref[...] = y.astype(o_ref.dtype)


def _res_ln_train_kernel(bits_ref, x_ref, r_ref, g_ref, b_ref, o_ref, *,
                         eps, d_valid, d_padded, threshold, scale):
    # inverted dropout: keep iff uniform uint32 bits >= round(p * 2**32)
    keep = bits_ref[...] >= jnp.uint32(threshold)
    x = jnp.where(keep, x_ref[...].astype(jnp.float32) * jnp.float32(scale), 0.0)
    x = x + r_ref[...].astype(jnp.float32)
    y = _layernorm(x, g_ref[...].astype(jnp.float32), b_ref[...].astype(jnp.float32),
                   eps=eps, d_valid=d_valid, d_padded=d_padded)
    o_ref[...] = y.astype(o_ref.dtype)


# ---------------------------------------------------------------------------
# Wrapper
# ---------------------------------------------------------------------------
def _round_up(x, m):
    return ((x + m - 1) // m) * m


def _pick_block_rows(n_rows, d_pad, target_bytes=2 << 20):
    """~2 MiB per input block; 8..1024 rows; multiple of 8; VMEM-safe on v7x."""
    rows = target_bytes // (d_pad * 4)
    rows = max(8, min(1024, int(rows)))
    rows = (rows // 8) * 8
    rows = min(rows, _round_up(n_rows, 8))
    return max(8, rows)


def _pad2d(a, rows, cols):
    pr, pc = rows - a.shape[0], cols - a.shape[1]
    if pr == 0 and pc == 0:
        return a
    return jnp.pad(a, ((0, pr), (0, pc)))


def residual_connection(tensor, pre_tensor, gamma, beta, *,
                        dropout_rate, training, rng_key=None, block_rows=None):
    """Pallas implementation of ResidualConnection.forward.

    tensor, pre_tensor: (B, S, D) float32
    gamma, beta:        (D,) LayerNorm affine params
    """
    B, S, D = tensor.shape
    N = B * S
    D_pad = _round_up(D, 128)                      # lane-dense stores
    if block_rows is None:
        block_rows = _pick_block_rows(N, D_pad)
    block_rows = max(8, (block_rows // 8) * 8)
    N_pad = _round_up(N, block_rows)               # ragged tail handled by padding
    grid = (N_pad // block_rows,)

    x = _pad2d(tensor.reshape(N, D), N_pad, D_pad)
    r = _pad2d(pre_tensor.reshape(N, D), N_pad, D_pad)
    g = _pad2d(gamma.reshape(1, D), 1, D_pad)
    b = _pad2d(beta.reshape(1, D), 1, D_pad)

    row_spec = pl.BlockSpec((block_rows, D_pad), lambda i: (i, 0))
    vec_spec = pl.BlockSpec((1, D_pad), lambda i: (0, 0))
    out_shape = jax.ShapeDtypeStruct((N_pad, D_pad), tensor.dtype)
    # Blocks are fully independent (mask comes from per-row random bits), so the
    # grid axis can be sharded across both TensorCores on v7x.
    cparams = pltpu.CompilerParams(dimension_semantics=("parallel",))

    use_dropout = training and dropout_rate > 0.0
    if use_dropout:
        if rng_key is None:
            rng_key = jax.random.PRNGKey(0)
        bits = jax.random.bits(rng_key, (N, D), dtype=jnp.uint32)
        bits = _pad2d(bits, N_pad, D_pad)
        threshold = min(int(round(dropout_rate * (1 << 32))), (1 << 32) - 1)
        scale = 1.0 / (1.0 - dropout_rate) if dropout_rate < 1.0 else 0.0
        kernel = functools.partial(_res_ln_train_kernel, eps=LN_EPS,
                                   d_valid=D, d_padded=D_pad,
                                   threshold=threshold, scale=scale)
        out = pl.pallas_call(
            kernel,
            out_shape=out_shape,
            grid=grid,
            in_specs=[row_spec, row_spec, row_spec, vec_spec, vec_spec],
            out_specs=row_spec,
            compiler_params=cparams,
        )(bits, x, r, g, b)
    else:
        kernel = functools.partial(_res_ln_eval_kernel, eps=LN_EPS,
                                   d_valid=D, d_padded=D_pad)
        out = pl.pallas_call(
            kernel,
            out_shape=out_shape,
            grid=grid,
            in_specs=[row_spec, row_spec, vec_spec, vec_spec],
            out_specs=row_spec,
            compiler_params=cparams,
        )(x, r, g, b)

    return out[:N, :D].reshape(B, S, D)


# ---------------------------------------------------------------------------
# Pure-JAX reference (mirrors the PyTorch module's forward)
# ---------------------------------------------------------------------------
def _reference(tensor, pre_tensor, gamma, beta, *, p=0.0, bits=None, eps=LN_EPS):
    t = tensor
    if bits is not None:
        threshold = min(int(round(p * (1 << 32))), (1 << 32) - 1)
        keep = bits >= jnp.uint32(threshold)
        t = jnp.where(keep, t * jnp.float32(1.0 / (1.0 - p)), 0.0)
    y = t + pre_tensor
    m = y.mean(-1, keepdims=True)
    v = ((y - m) ** 2).mean(-1, keepdims=True)
    return (y - m) / jnp.sqrt(v + eps) * gamma + beta


if __name__ == "__main__":
    key = jax.random.PRNGKey(0)
    B, S, D = 2, 8, 128          # batch, seq, embedding_dim
    dropout_rate = 0.1

    k1, k2, k3, kdrop = jax.random.split(key, 4)
    tensor = jax.random.normal(k1, (B, S, D), dtype=jnp.float32)
    pre_tensor = jax.random.normal(k2, (B, S, D), dtype=jnp.float32)

    # nn.LayerNorm default init: weight = 1, bias = 0 (deterministic)
    gamma = jnp.ones((D,), dtype=jnp.float32)
    beta = jnp.zeros((D,), dtype=jnp.float32)

    # ---- eval mode: dropout is identity ------------------------------------
    out_eval = jax.block_until_ready(
        residual_connection(tensor, pre_tensor, gamma, beta,
                            dropout_rate=dropout_rate, training=False))
    ref_eval = _reference(tensor, pre_tensor, gamma, beta)
    assert jnp.allclose(out_eval, ref_eval, atol=1e-5, rtol=1e-5), "eval-mode mismatch"

    # ---- training mode: exact check with the same host-generated bits ------
    out_train = jax.block_until_ready(
        residual_connection(tensor, pre_tensor, gamma, beta,
                            dropout_rate=dropout_rate, training=True, rng_key=kdrop))
    bits = jax.random.bits(kdrop, (B * S, D), dtype=jnp.uint32).reshape(B, S, D)
    ref_train = _reference(tensor, pre_tensor, gamma, beta, p=dropout_rate, bits=bits)
    assert out_train.shape == (B, S, D)
    assert jnp.allclose(out_train, ref_train, atol=1e-4, rtol=1e-4), "train-mode mismatch"

    # ---- non-multiple-of-128 embedding dim exercises the lane-padding path --
    D2 = 96
    t2 = jax.random.normal(k3, (B, S, D2), dtype=jnp.float32)
    r2 = jax.random.normal(k1, (B, S, D2), dtype=jnp.float32)
    g2 = jax.random.normal(k2, (D2,), dtype=jnp.float32)
    b2 = jax.random.normal(k3, (D2,), dtype=jnp.float32)
    out2 = jax.block_until_ready(
        residual_connection(t2, r2, g2, b2, dropout_rate=dropout_rate, training=False))
    ref2 = _reference(t2, r2, g2, b2)
    assert jnp.allclose(out2, ref2, atol=1e-5, rtol=1e-5), "padded-D mismatch"

    print("KERNEL_OK")
</pallas_src>

<mosaic_0001>
module attributes {stable_mosaic.version = 11 : i64} {
  func.func @_res_ln_eval_kernel(%arg0: i32, %arg1: memref<16x128xf32, #tpu.memory_space<vmem>>, %arg2: memref<16x128xf32, #tpu.memory_space<vmem>>, %arg3: memref<1x128xf32, #tpu.memory_space<vmem>>, %arg4: memref<1x128xf32, #tpu.memory_space<vmem>>, %arg5: memref<16x128xf32, #tpu.memory_space<vmem>>) attributes {dimension_semantics = [#tpu.dimension_semantics<parallel>], iteration_bounds = array<i64: 1>, scalar_prefetch = 0 : i64, scratch_operands = 0 : i64, tpu.core_type = #tpu.core_type<tc>, window_params = [{transform_indices = @transform_0, window_bounds = array<i64: 16, 128>}, {transform_indices = @transform_1, window_bounds = array<i64: 16, 128>}, {pipeline_mode = #tpu.pipeline_mode<synchronous>, transform_indices = @transform_2, window_bounds = array<i64: 1, 128>}, {pipeline_mode = #tpu.pipeline_mode<synchronous>, transform_indices = @transform_3, window_bounds = array<i64: 1, 128>}, {transform_indices = @transform_4, window_bounds = array<i64: 16, 128>}]} {
    %c0 = arith.constant 0 : index
    %c0_0 = arith.constant 0 : index
    %0 = vector.load %arg1[%c0, %c0_0] : memref<16x128xf32, #tpu.memory_space<vmem>>, vector<16x128xf32>
    %c0_1 = arith.constant 0 : index
    %c0_2 = arith.constant 0 : index
    %1 = vector.load %arg2[%c0_1, %c0_2] : memref<16x128xf32, #tpu.memory_space<vmem>>, vector<16x128xf32>
    %2 = arith.addf %0, %1 : vector<16x128xf32>
    %c0_3 = arith.constant 0 : index
    %c0_4 = arith.constant 0 : index
    %3 = vector.load %arg3[%c0_3, %c0_4] : memref<1x128xf32, #tpu.memory_space<vmem>>, vector<1x128xf32>
    %c0_5 = arith.constant 0 : index
    %c0_6 = arith.constant 0 : index
    %4 = vector.load %arg4[%c0_5, %c0_6] : memref<1x128xf32, #tpu.memory_space<vmem>>, vector<1x128xf32>
    %cst = arith.constant dense<0.000000e+00> : vector<16xf32>
    %5 = vector.multi_reduction <add>, %2, %cst [1] : vector<16x128xf32> to vector<16xf32>
    %6 = vector.shape_cast %5 : vector<16xf32> to vector<16x1xf32>
    %cst_7 = arith.constant 7.812500e-03 : f32
    %7 = vector.broadcast %cst_7 : f32 to vector<16x1xf32>
    %8 = arith.mulf %6, %7 : vector<16x1xf32>
    %9 = vector.broadcast %8 : vector<16x1xf32> to vector<16x128xf32>
    %10 = arith.subf %2, %9 : vector<16x128xf32>
    %11 = arith.mulf %10, %10 : vector<16x128xf32>
    %cst_8 = arith.constant dense<0.000000e+00> : vector<16xf32>
    %12 = vector.multi_reduction <add>, %11, %cst_8 [1] : vector<16x128xf32> to vector<16xf32>
    %13 = vector.shape_cast %12 : vector<16xf32> to vector<16x1xf32>
    %cst_9 = arith.constant 7.812500e-03 : f32
    %14 = vector.broadcast %cst_9 : f32 to vector<16x1xf32>
    %15 = arith.mulf %13, %14 : vector<16x1xf32>
    %cst_10 = arith.constant 9.99999974E-6 : f32
    %16 = vector.broadcast %cst_10 : f32 to vector<16x1xf32>
    %17 = arith.addf %15, %16 : vector<16x1xf32>
    %18 = math.rsqrt %17 : vector<16x1xf32>
    %19 = vector.broadcast %18 : vector<16x1xf32> to vector<16x128xf32>
    %20 = arith.mulf %10, %19 : vector<16x128xf32>
    %21 = vector.broadcast %3 : vector<1x128xf32> to vector<16x128xf32>
    %22 = arith.mulf %20, %21 : vector<16x128xf32>
    %23 = vector.broadcast %4 : vector<1x128xf32> to vector<16x128xf32>
    %24 = arith.addf %22, %23 : vector<16x128xf32>
    %c0_11 = arith.constant 0 : index
    %c0_12 = arith.constant 0 : index
    %25 = vector.load %arg5[%c0_11, %c0_12] : memref<16x128xf32, #tpu.memory_space<vmem>>, vector<16x128xf32>
    tpu.vector_store %arg5[%c0_11, %c0_12], %24 {strides = array<i32>} : memref<16x128xf32, #tpu.memory_space<vmem>>, vector<16x128xf32>,
    return
  }
  func.func @transform_0(%arg0: i32) -> (i32, i32) {
    %c0_i32 = arith.constant 0 : i32
    %c0_i32_0 = arith.constant 0 : i32
    return %arg0, %c0_i32 : i32, i32
  }
  func.func @transform_1(%arg0: i32) -> (i32, i32) {
    %c0_i32 = arith.constant 0 : i32
    %c0_i32_0 = arith.constant 0 : i32
    return %arg0, %c0_i32 : i32, i32
  }
  func.func @transform_2(%arg0: i32) -> (i32, i32) {
    %c0_i32 = arith.constant 0 : i32
    %c0_i32_0 = arith.constant 0 : i32
    %c0_i32_1 = arith.constant 0 : i32
    return %c0_i32, %c0_i32_0 : i32, i32
  }
  func.func @transform_3(%arg0: i32) -> (i32, i32) {
    %c0_i32 = arith.constant 0 : i32
    %c0_i32_0 = arith.constant 0 : i32
    %c0_i32_1 = arith.constant 0 : i32
    return %c0_i32, %c0_i32_0 : i32, i32
  }
  func.func @transform_4(%arg0: i32) -> (i32, i32) {
    %c0_i32 = arith.constant 0 : i32
    %c0_i32_0 = arith.constant 0 : i32
    return %arg0, %c0_i32 : i32, i32
  }
}

</mosaic_0001>

<bundles_post_ra>
// kernel: tpu_custom_call.1
= control target key start
LH: loop header
LB: loop body
LE: loop exit
PB: predicated region body
PF: predicated region fallthrough
CT: control target
= control target key end

     0   :  { %9 = vsyncpa [#allocation3], 0  ;;  %s276_s0 = inlined_call_operand.hbm [shape: f32[16,128], index: 0, kind: input, shape index: {}]   ;;  %s277_s1 = inlined_call_operand.hbm [shape: f32[16,128], index: 1, kind: input, shape index: {}]   ;;  %s278_s2 = inlined_call_operand.vmem [shape: f32[1,128], index: 2, kind: input, shape index: {}]   ;;  %s279_s3 = inlined_call_operand.vmem [shape: f32[1,128], index: 3, kind: input, shape index: {}]   ;;  %s280_s4 = inlined_call_operand.hbm [shape: f32[16,128], index: 4, kind: output, shape index: {}]  }
   0x1   :  { %10 = vsyncpa [#allocation6], 0 }
   0x2   :  { %11 = vsyncpa [#allocation4], 0  ;;  %s195_s15 = smov [#allocation2]   ;;  %s123_s19 = scalar_lea.hbm %s276_s0, 256 }
   0x3   :  { %s17_s16 = sshll.u32 %s195_s15, 4  ;;  %p124_p0 = scmp.ne.s32.totalorder %s276_s0, %s123_s19  ;;  %s18_s16 = int_to_ptr.vmem [resolvable:$true] %s17_s16 }
   0x4   :  { %p127_p1 = scmp.lt.u32.totalorder %s123_s19, %s276_s0 }
   0x6   :  { %p129_p2 = pnand %p127_p1, %p124_p0 }
   0x8   :  { %132 = shalt.err (!%p129_p2)
}
   0x9   :  { %s133_s24 = scalar_lea.vmem %s18_s16, 256  ;;  %p138_p4 = scmp.lt.s32.totalorder %s18_s16, %s18_s16 }
   0xa   :  { %p134_p3 = scmp.ne.s32.totalorder %s18_s16, %s133_s24  ;;  %p139_p5 = scmp.lt.s32.totalorder %s133_s24, %s133_s24 }
   0xc   :  { %p140_p6 = por %p139_p5, %p138_p4 }
   0xe   :  { %p141_p7 = pnand %p140_p6, %p134_p3 }
  0x10   :  { %144 = shalt.err (!%p141_p7)
}
  0x11   :  { %s196_s25 = smov 128   ;;  %s197_s26 = smov 8  }
  0x12   :  { %23 = dma.hbm_to_vmem [thread:$0]  %s276_s0, 256, %s18_s16, [#allocation3], %s196_s25, %s196_s25, %s197_s26  }
  0x13   :  { %s198_s29 = smov [#allocation5]   ;;  %s145_s7 = scalar_lea.hbm %s277_s1, 256 }
  0x14   :  { %s29_s30 = sshll.u32 %s198_s29, 4  ;;  %p146_p8 = scmp.ne.s32.totalorder %s277_s1, %s145_s7  ;;  %s30_s30 = int_to_ptr.vmem [resolvable:$true] %s29_s30 }
  0x15   :  { %p149_p9 = scmp.lt.u32.totalorder %s145_s7, %s277_s1 }
  0x17   :  { %p151_p10 = pnand %p149_p9, %p146_p8 }
  0x19   :  { %154 = shalt.err (!%p151_p10)
}
  0x1a   :  { %s155_s12 = scalar_lea.vmem %s30_s30, 256  ;;  %p160_p12 = scmp.lt.s32.totalorder %s30_s30, %s30_s30 }
  0x1b   :  { %p156_p11 = scmp.ne.s32.totalorder %s30_s30, %s155_s12  ;;  %p161_p13 = scmp.lt.s32.totalorder %s155_s12, %s155_s12 }
  0x1d   :  { %p162_p0 = por %p161_p13, %p160_p12 }
  0x1f   :  { %p163_p1 = pnand %p162_p0, %p156_p11 }
  0x21   :  { %166 = shalt.err (!%p163_p1)
}
  0x22   :  { %35 = dma.hbm_to_vmem [thread:$0]  %s277_s1, 256, %s30_s30, [#allocation6], %s196_s25, %s196_s25, %s197_s26  }
  0x23   :  { %189 = dma.done.wait [#allocation3], 256  }
  0x24   :  { %190 = vsyncadd [#allocation3], 4294967040 }
  0x25   :  { %191 = dma.done.wait [#allocation6], 256  }
  0x26   :  { %192 = vsyncadd [#allocation6], 4294967040  ;;  %v46_v0 = vld [vmem:[#allocation2] sm:$0xff]  ;;  %v48_v1 = vld [vmem:[#allocation5] sm:$0xff]  ;;  %s199_s17 = smov [#allocation7]  }
  0x27   :  { %v47_v2 = vld [vmem:[#allocation2 + $0x8] sm:$0xff]  ;;  %v50_v3 = vadd.f32 %v48_v1, %v46_v0  ;;  %v49_v4 = vld [vmem:[#allocation5 + $0x8] sm:$0xff]  ;;  %v112_v21 = vld [vmem:[%s278_s2] ss:$0 sm:$0xff]  ;;  %s99_s18 = sshll.u32 %s199_s17, 4  ;;  %s100_s18 = int_to_ptr.vmem [resolvable:$true] %s99_s18 }
  0x28   :  { %v51_v5 = vadd.f32 %v49_v4, %v47_v2  ;;  %v113_v23 = vld [vmem:[%s279_s3] ss:$0 sm:$0xff]  ;;  %s167_s19 = scalar_lea.vmem %s100_s18, 256  ;;  %p172_p3 = scmp.lt.s32.totalorder %s100_s18, %s100_s18 }
  0x29   :  { %54 = vadd.xlane.f32.xlu0 %v50_v3  ;;  %p168_p2 = scmp.ne.s32.totalorder %s100_s18, %s167_s19  ;;  %p173_p4 = scmp.lt.s32.totalorder %s167_s19, %s167_s19 }
  0x2b   :  { %p174_p5 = por %p173_p4, %p172_p3 }
  0x2d   :  { %56 = vadd.xlane.f32.xlu0 %v51_v5  ;;  %p175_p6 = pnand %p174_p5, %p168_p2 }
  0xb6   :  { %v55_v6 = vpop.xlane.xlu0 %54 }
  0xb7   :  { %v58_v7 = vmul.f32 0.0078125, %v55_v6 }
  0xb9   :  { %v60_v8 = vsub.f32 %v50_v3, %v58_v7 }
  0xba   :  { %v57_v9 = vpop.xlane.xlu0 %56 }
  0xbb   :  { %v59_v10 = vmul.f32 0.0078125, %v57_v9  ;;  %v62_v11 = vmul.f32 %v60_v8, %v60_v8 }
  0xbd   :  { %v61_v12 = vsub.f32 %v51_v5, %v59_v10  ;;  %64 = vadd.xlane.f32.xlu1 %v62_v11 }
  0xbf   :  { %v63_v13 = vmul.f32 %v61_v12, %v61_v12 }
  0xc1   :  { %66 = vadd.xlane.f32.xlu1 %v63_v13 }
 0x14a   :  { %v65_v14 = vpop.xlane.xlu1 %64 }
 0x14b   :  { %v68_v15 = vmul.f32 0.0078125, %v65_v14 }
 0x14d   :  { %v70_v16 = vadd.f32 1e-05, %v68_v15 }
 0x14e   :  { %v67_v17 = vpop.xlane.xlu1 %66 }
 0x14f   :  { %119 = vrsqrt.f32 %v70_v16  ;;  %v69_v18 = vmul.f32 0.0078125, %v67_v17 }
 0x151   :  { %v71_v19 = vadd.f32 1e-05, %v69_v18 }
 0x153   :  { %121 = vrsqrt.f32 %v71_v19 }
 0x159   :  { %v120_v20 = vpop.eup %119 }
 0x15a   :  { %v74_v22 = vmul.f32 %v120_v20, %v60_v8 }
 0x15c   :  { %v82_v24 = vmul.f32 %v112_v21, %v74_v22 }
 0x15d   :  { %v122_v25 = vpop.eup %121 }
 0x15e   :  { %v75_v26 = vmul.f32 %v122_v25, %v61_v12  ;;  %v90_v27 = vadd.f32 %v113_v23, %v82_v24 }
 0x160   :  { %v83_v28 = vmul.f32 %v112_v21, %v75_v26  ;;  %92 = vst [vmem:[#allocation7] sm:$0xff] %v90_v27 }
 0x162   :  { %v91_v29 = vadd.f32 %v113_v23, %v83_v28 }
 0x164   :  { %93 = vst [vmem:[#allocation7 + $0x8] sm:$0xff] %v91_v29 }
 0x165   :  { %178 = shalt.err (!%p175_p6)
}
 0x166   :  { %s179_s20 = scalar_lea.hbm %s280_s4, 256 }
 0x167   :  { %p180_p7 = scmp.ne.s32.totalorder %s280_s4, %s179_s20  ;;  %p183_p8 = scmp.lt.u32.totalorder %s179_s20, %s280_s4 }
 0x169   :  { %p185_p9 = pnand %p183_p8, %p180_p7 }
 0x16b   :  { %188 = shalt.err (!%p185_p9)
}
 0x16c   :  { %105 = dma.vmem_to_hbm [thread:$0]  %s100_s18, 256, %s280_s4, [#allocation4], %s196_s25, %s196_s25, %s197_s26  }
 0x16d   :  { %193 = dma.done.wait [#allocation4], 256  }
 0x16e   :  { %194 = vsyncadd [#allocation4], 4294967040 }
 0x16f   :  { %109 = vsyncpa [#allocation3], 1 }
 0x170   :  { %110 = vsyncpa [#allocation6], 1 }
 0x171   :  { %111 = vsyncpa [#allocation4], 1 }

</bundles_post_ra>
